<compile_context>
chip_gen: v6e
topology: v6e:2x2x1
jax: 0.10.0
libtpu: 0.0.40
codegen_flags: <defaults>
</compile_context>

<pallas_src>
import functools
import jax
import jax.numpy as jnp
from jax import lax
from jax.experimental import pallas as pl
from jax.experimental.pallas import tpu as pltpu


# ----------------------------- Pallas kernel --------------------------------
def _resblock_kernel(x_ref, w1_ref, b1_ref, w2_ref, b2_ref, wp_ref, bp_ref,
                     o_ref, *, K, P, cb, slope):
    # x_ref : (bn, Cin, L)   input block  (act dtype; channels on sublanes, L on lanes)
    # w1_ref: (K, Cout, Cin) conv1 weight per tap (f32)
    # w2_ref: (K, Cout, Cout) conv2 weight per tap
    # wp_ref: (Cout, Cin)    1x1 residual projection weight
    # b*_ref: (Cout, 1)
    # o_ref : (bn, Cout, L)  output block (act dtype)
    f32 = jnp.float32
    bn, Cin, L = x_ref.shape
    Cout = o_ref.shape[1]
    nchunks = bn // cb

    # Hoisted once per grid step (JAX does not CSE broadcast_in_dim inside
    # loops): broadcast the tiny weights across the chunk batch so every conv
    # tap is one batched MXU dot with f32 accumulation.
    w1b = [jnp.broadcast_to(w1_ref[k], (cb, Cout, Cin)) for k in range(K)]
    w2b = [jnp.broadcast_to(w2_ref[k], (cb, Cout, Cout)) for k in range(K)]
    wpb = jnp.broadcast_to(wp_ref[...], (cb, Cout, Cin))
    b1 = b1_ref[...][None]          # (1, Cout, 1)
    b2 = b2_ref[...][None]
    bp = bp_ref[...][None]

    # Per-tap lane validity masks generated in-kernel (nothing DMA'd from HBM):
    # tap with offset d = k - P reads source position l + d, valid iff it lies
    # inside this sample's [0, L) range ('same' zero padding).
    lane = lax.broadcasted_iota(jnp.int32, (1, 1, L), 2)
    valid = [jnp.logical_and(lane + (k - P) >= 0, lane + (k - P) < L)
             for k in range(K)]

    def shifted(v, k):
        # out[..., l] = v[..., l + (k - P)], zero outside [0, L).
        d = k - P
        if d == 0:
            return v
        rolled = pltpu.roll(v, (-d) % L, axis=2)     # XLU; wrapped lanes masked below
        return jnp.where(valid[k], rolled, 0.0)

    def conv(wb, v):
        # sum_k  w[k] @ shifted(v, k)  as K batched MXU dots (f32 accumulate).
        # TODO(synk): for larger channel counts, stack the K taps along the
        # channel axis and do a single deeper matmul instead of K small ones.
        acc = jnp.einsum('boc,bcl->bol', wb[0], shifted(v, 0),
                         preferred_element_type=f32)
        for k in range(1, K):
            acc = acc + jnp.einsum('boc,bcl->bol', wb[k], shifted(v, k),
                                   preferred_element_type=f32)
        return acc

    def chunk(i, carry):
        s = i * cb
        x = x_ref[pl.ds(s, cb), :, :].astype(f32)            # (cb, Cin, L)
        h = conv(w1b, x) + b1
        h = jnp.where(h >= 0.0, h, slope * h)                # LeakyReLU(0.2)
        y = conv(w2b, h) + b2
        y0 = jnp.einsum('boc,bcl->bol', wpb, x,
                        preferred_element_type=f32) + bp     # 1x1 residual proj
        out = y0 + y
        o_ref[pl.ds(s, cb), :, :] = jnp.where(out >= 0.0, out,
                                              slope * out).astype(o_ref.dtype)
        return carry

    lax.fori_loop(0, nchunks, chunk, 0)


# ------------------------------ JAX wrapper ----------------------------------
def _vmem_limit_bytes():
    phys = 64 * 1024 * 1024                      # conservative fallback (v7x-sized)
    try:
        phys = int(pltpu.get_tpu_info().vmem_capacity_bytes)
    except Exception:
        pass
    # Never request all of physical VMEM (v7x has 64 MiB/TC): leave headroom
    # for Pallas double buffers and Mosaic internal scratch.
    return min((phys * 3) // 4, 96 * 1024 * 1024)


def resblock_pallas(x_ncl, w1, b1, w2, b2, wp, bp, *, padding, slope=0.2,
                    act_dtype=jnp.float32):
    """x_ncl: (N, Cin, L).  Weights already spectrally normalized, PyTorch
    layouts: w1 (Cout, Cin, K), w2 (Cout, Cout, K), wp (Cout, Cin, 1) or None
    (identity residual when in_channels == out_channels).
    Returns (N, Cout, L) in act_dtype."""
    N, Cin, L = x_ncl.shape
    Cout, _, K = w1.shape
    P = padding
    assert K == 2 * P + 1, "kernel assumes 'same' conv: stride=1, K == 2*padding+1"
    # TODO(synk): stride != 1 / non-'same' padding not implemented.

    f32 = jnp.float32
    # Weight layout glue (tiny tensors, no HBM concern): tap-major per-k slices.
    w1s = jnp.transpose(w1, (2, 0, 1)).astype(f32)           # (K, Cout, Cin)
    w2s = jnp.transpose(w2, (2, 0, 1)).astype(f32)           # (K, Cout, Cout)
    b1c = b1.reshape(Cout, 1).astype(f32)
    b2c = b2.reshape(Cout, 1).astype(f32)
    if wp is None:                                           # in_channels == out_channels
        wpm = jnp.eye(Cout, Cin, dtype=f32)
        bpc = jnp.zeros((Cout, 1), f32)
    else:
        wpm = wp[:, :, 0].astype(f32)                        # (Cout, Cin)
        bpc = bp.reshape(Cout, 1).astype(f32)

    x = x_ncl.astype(act_dtype)       # bf16 storage halves HBM traffic (v5e/v6e/v7x)

    # --- tile sizing -----------------------------------------------------------
    vmem_limit = _vmem_limit_bytes()
    act_bytes = jnp.dtype(act_dtype).itemsize
    io_per_col = 2 * (Cin + Cout) * act_bytes        # double-buffered in+out per column
    target_cols = int(min(max((vmem_limit // 2) // max(io_per_col, 1), 1),
                          128 * 1024))               # 32K-128K fused lanes per step

    # Batch elements fused per grid step; keep >= 2 grid steps so both v7x
    # TensorCores get work and the pipeline overlaps DMA with compute.
    bn_cap = max(1, min(N, target_cols // max(L, 1)))
    if N >= 2:
        bn_cap = min(bn_cap, N // 2)
    bn = 1
    for d in range(1, bn_cap + 1):
        if N % d == 0:
            bn = d
    # TODO(synk): for awkward N (e.g. prime) this falls back to bn=1; a masked
    # ragged last tile would keep lanes dense for tiny-L / huge-N workloads.
    T = N // bn

    # In-kernel chunk over the batch axis (~2K lanes of live f32 temporaries)
    # so intermediates stay bounded even when the block is large.
    cb_cap = max(1, min(bn, 2048 // max(L, 1)))
    cb = 1
    for d in range(1, cb_cap + 1):
        if bn % d == 0:
            cb = d
    # TODO(synk): for very long L (>~64K) additionally tile the lane axis with
    # K-1 halo columns inside the kernel; pad L to a multiple of 128 for fully
    # lane-dense stores when L % 128 != 0.

    kernel = functools.partial(_resblock_kernel, K=K, P=P, cb=cb, slope=slope)

    def fixed(shape):
        nd = len(shape)
        return pl.BlockSpec(shape, lambda t, _nd=nd: (0,) * _nd)

    out = pl.pallas_call(
        kernel,
        out_shape=jax.ShapeDtypeStruct((N, Cout, L), act_dtype),
        grid_spec=pltpu.PrefetchScalarGridSpec(
            num_scalar_prefetch=0,
            grid=(T,),
            in_specs=[
                pl.BlockSpec((bn, Cin, L), lambda t: (t, 0, 0)),   # x
                fixed((K, Cout, Cin)),                             # w1
                fixed((Cout, 1)),                                  # b1
                fixed((K, Cout, Cout)),                            # w2
                fixed((Cout, 1)),                                  # b2
                fixed((Cout, Cin)),                                # wp
                fixed((Cout, 1)),                                  # bp
            ],
            out_specs=pl.BlockSpec((bn, Cout, L), lambda t: (t, 0, 0)),
        ),
        compiler_params=pltpu.CompilerParams(
            dimension_semantics=("parallel",),
            vmem_limit_bytes=int(vmem_limit)),
    )(x, w1s, b1c, w2s, b2c, wpm, bpc)
    return out


# --------------------- parameter setup / spectral norm -----------------------
def spectral_normalize(w, n_iter=50):
    """Divide the weight by its largest singular value (flattened to 2D)."""
    wm = w.reshape(w.shape[0], -1)
    u = jax.random.normal(jax.random.PRNGKey(42), (wm.shape[0],), jnp.float32)
    v = wm.T @ u
    for _ in range(n_iter):
        v = wm.T @ u
        v = v / (jnp.linalg.norm(v) + 1e-12)
        u = wm @ v
        u = u / (jnp.linalg.norm(u) + 1e-12)
    sigma = u @ (wm @ v)
    return w / sigma


def leaky_relu(x, slope=0.2):
    return jnp.where(x >= 0, x, slope * x)


def resblock_reference(x, w1, b1, w2, b2, wp, bp, *, padding, slope=0.2):
    """Pure-JAX reference of the PyTorch forward (NCL layout)."""
    dn = ('NCH', 'OIH', 'NCH')
    conv = lambda inp, w, p: lax.conv_general_dilated(
        inp, w, window_strides=(1,), padding=[(p, p)], dimension_numbers=dn)
    y = leaky_relu(conv(x, w1, padding) + b1[None, :, None], slope)
    y = conv(y, w2, padding) + b2[None, :, None]
    y0 = conv(x, wp, 0) + bp[None, :, None] if wp is not None else x
    return leaky_relu(y0 + y, slope)


# --------------------------------- main --------------------------------------
if __name__ == "__main__":
    # ResBlock(in_channels=4, out_channels=8, kernel_size=3, stride=1, padding=1)
    N, Cin, Cout, K, L, P = 2, 4, 8, 3, 16, 1

    key = jax.random.PRNGKey(0)
    k1, k2, k3, k4, k5, k6, k7 = jax.random.split(key, 7)

    x = jax.random.normal(k1, (N, Cin, L), jnp.float32)          # NCL input

    w1 = spectral_normalize(jax.random.normal(k2, (Cout, Cin, K), jnp.float32) * 0.3)
    b1 = jax.random.normal(k3, (Cout,), jnp.float32) * 0.1
    w2 = spectral_normalize(jax.random.normal(k4, (Cout, Cout, K), jnp.float32) * 0.3)
    b2 = jax.random.normal(k5, (Cout,), jnp.float32) * 0.1
    wp = spectral_normalize(jax.random.normal(k6, (Cout, Cin, 1), jnp.float32) * 0.3)
    bp = jax.random.normal(k7, (Cout,), jnp.float32) * 0.1

    ref = resblock_reference(x, w1, b1, w2, b2, wp, bp, padding=P)

    # f32 path: strict check against the f32 reference.
    out = resblock_pallas(x, w1, b1, w2, b2, wp, bp, padding=P)
    out = jax.block_until_ready(out)
    assert out.shape == (N, Cout, L), out.shape
    assert jnp.allclose(out, ref, atol=1e-4, rtol=1e-4), \
        float(jnp.max(jnp.abs(out - ref)))

    # bf16 activation-storage path (v6e/v7x/v5e HBM-traffic optimization):
    # looser tolerance since inputs/outputs are quantized to bf16 in HBM.
    out_bf = resblock_pallas(x, w1, b1, w2, b2, wp, bp, padding=P,
                             act_dtype=jnp.bfloat16)
    out_bf = jax.block_until_ready(out_bf).astype(jnp.float32)
    assert jnp.allclose(out_bf, ref, atol=5e-2, rtol=5e-2), \
        float(jnp.max(jnp.abs(out_bf - ref)))

    print("KERNEL_OK")
</pallas_src>

<mosaic_0001>
module attributes {stable_mosaic.version = 11 : i64} {
  func.func @_resblock_kernel(%arg0: i32, %arg1: memref<1x4x16xf32, #tpu.memory_space<vmem>>, %arg2: memref<3x8x4xf32, #tpu.memory_space<vmem>>, %arg3: memref<8x1xf32, #tpu.memory_space<vmem>>, %arg4: memref<3x8x8xf32, #tpu.memory_space<vmem>>, %arg5: memref<8x1xf32, #tpu.memory_space<vmem>>, %arg6: memref<8x4xf32, #tpu.memory_space<vmem>>, %arg7: memref<8x1xf32, #tpu.memory_space<vmem>>, %arg8: memref<1x8x16xf32, #tpu.memory_space<vmem>>) attributes {dimension_semantics = [#tpu.dimension_semantics<parallel>], iteration_bounds = array<i64: 2>, scalar_prefetch = 0 : i64, scratch_operands = 0 : i64, tpu.core_type = #tpu.core_type<tc>, window_params = [{transform_indices = @transform_0, window_bounds = array<i64: 1, 4, 16>}, {pipeline_mode = #tpu.pipeline_mode<synchronous>, transform_indices = @transform_1, window_bounds = array<i64: 3, 8, 4>}, {pipeline_mode = #tpu.pipeline_mode<synchronous>, transform_indices = @transform_2, window_bounds = array<i64: 8, 1>}, {pipeline_mode = #tpu.pipeline_mode<synchronous>, transform_indices = @transform_3, window_bounds = array<i64: 3, 8, 8>}, {pipeline_mode = #tpu.pipeline_mode<synchronous>, transform_indices = @transform_4, window_bounds = array<i64: 8, 1>}, {pipeline_mode = #tpu.pipeline_mode<synchronous>, transform_indices = @transform_5, window_bounds = array<i64: 8, 4>}, {pipeline_mode = #tpu.pipeline_mode<synchronous>, transform_indices = @transform_6, window_bounds = array<i64: 8, 1>}, {transform_indices = @transform_7, window_bounds = array<i64: 1, 8, 16>}]} {
    %c0 = arith.constant 0 : index
    %c0_0 = arith.constant 0 : index
    %c0_1 = arith.constant 0 : index
    %0 = vector.load %arg2[%c0, %c0_0, %c0_1] : memref<3x8x4xf32, #tpu.memory_space<vmem>>, vector<1x8x4xf32>
    %1 = vector.shape_cast %0 : vector<1x8x4xf32> to vector<8x4xf32>
    %2 = vector.shape_cast %1 : vector<8x4xf32> to vector<1x8x4xf32>
    %c1 = arith.constant 1 : index
    %c0_2 = arith.constant 0 : index
    %c0_3 = arith.constant 0 : index
    %3 = vector.load %arg2[%c1, %c0_2, %c0_3] : memref<3x8x4xf32, #tpu.memory_space<vmem>>, vector<1x8x4xf32>
    %4 = vector.shape_cast %3 : vector<1x8x4xf32> to vector<8x4xf32>
    %5 = vector.shape_cast %4 : vector<8x4xf32> to vector<1x8x4xf32>
    %c2 = arith.constant 2 : index
    %c0_4 = arith.constant 0 : index
    %c0_5 = arith.constant 0 : index
    %6 = vector.load %arg2[%c2, %c0_4, %c0_5] : memref<3x8x4xf32, #tpu.memory_space<vmem>>, vector<1x8x4xf32>
    %7 = vector.shape_cast %6 : vector<1x8x4xf32> to vector<8x4xf32>
    %8 = vector.shape_cast %7 : vector<8x4xf32> to vector<1x8x4xf32>
    %c0_6 = arith.constant 0 : index
    %c0_7 = arith.constant 0 : index
    %c0_8 = arith.constant 0 : index
    %9 = vector.load %arg4[%c0_6, %c0_7, %c0_8] : memref<3x8x8xf32, #tpu.memory_space<vmem>>, vector<1x8x8xf32>
    %10 = vector.shape_cast %9 : vector<1x8x8xf32> to vector<8x8xf32>
    %11 = vector.shape_cast %10 : vector<8x8xf32> to vector<1x8x8xf32>
    %c1_9 = arith.constant 1 : index
    %c0_10 = arith.constant 0 : index
    %c0_11 = arith.constant 0 : index
    %12 = vector.load %arg4[%c1_9, %c0_10, %c0_11] : memref<3x8x8xf32, #tpu.memory_space<vmem>>, vector<1x8x8xf32>
    %13 = vector.shape_cast %12 : vector<1x8x8xf32> to vector<8x8xf32>
    %14 = vector.shape_cast %13 : vector<8x8xf32> to vector<1x8x8xf32>
    %c2_12 = arith.constant 2 : index
    %c0_13 = arith.constant 0 : index
    %c0_14 = arith.constant 0 : index
    %15 = vector.load %arg4[%c2_12, %c0_13, %c0_14] : memref<3x8x8xf32, #tpu.memory_space<vmem>>, vector<1x8x8xf32>
    %16 = vector.shape_cast %15 : vector<1x8x8xf32> to vector<8x8xf32>
    %17 = vector.shape_cast %16 : vector<8x8xf32> to vector<1x8x8xf32>
    %c0_15 = arith.constant 0 : index
    %c0_16 = arith.constant 0 : index
    %18 = vector.load %arg6[%c0_15, %c0_16] : memref<8x4xf32, #tpu.memory_space<vmem>>, vector<8x4xf32>
    %19 = vector.shape_cast %18 : vector<8x4xf32> to vector<1x8x4xf32>
    %c0_17 = arith.constant 0 : index
    %c0_18 = arith.constant 0 : index
    %20 = vector.load %arg3[%c0_17, %c0_18] : memref<8x1xf32, #tpu.memory_space<vmem>>, vector<8x1xf32>
    %21 = vector.shape_cast %20 : vector<8x1xf32> to vector<1x8x1xf32>
    %c0_19 = arith.constant 0 : index
    %c0_20 = arith.constant 0 : index
    %22 = vector.load %arg5[%c0_19, %c0_20] : memref<8x1xf32, #tpu.memory_space<vmem>>, vector<8x1xf32>
    %23 = vector.shape_cast %22 : vector<8x1xf32> to vector<1x8x1xf32>
    %c0_21 = arith.constant 0 : index
    %c0_22 = arith.constant 0 : index
    %24 = vector.load %arg7[%c0_21, %c0_22] : memref<8x1xf32, #tpu.memory_space<vmem>>, vector<8x1xf32>
    %25 = vector.shape_cast %24 : vector<8x1xf32> to vector<1x8x1xf32>
    %26 = tpu.iota {dimensions = array<i32: 2>} : vector<1x1x16xi32>
    %c-1_i32 = arith.constant -1 : i32
    %27 = vector.broadcast %c-1_i32 : i32 to vector<1x1x16xi32>
    %28 = arith.addi %26, %27 : vector<1x1x16xi32>
    %c0_i32 = arith.constant 0 : i32
    %29 = vector.broadcast %c0_i32 : i32 to vector<1x1x16xi32>
    %30 = arith.cmpi sge, %28, %29 : vector<1x1x16xi32>
    %c-1_i32_23 = arith.constant -1 : i32
    %31 = vector.broadcast %c-1_i32_23 : i32 to vector<1x1x16xi32>
    %32 = arith.addi %26, %31 : vector<1x1x16xi32>
    %c16_i32 = arith.constant 16 : i32
    %33 = vector.broadcast %c16_i32 : i32 to vector<1x1x16xi32>
    %34 = arith.cmpi slt, %32, %33 : vector<1x1x16xi32>
    %35 = arith.andi %30, %34 : vector<1x1x16xi1>
    %c1_i32 = arith.constant 1 : i32
    %36 = vector.broadcast %c1_i32 : i32 to vector<1x1x16xi32>
    %37 = arith.addi %26, %36 : vector<1x1x16xi32>
    %c0_i32_24 = arith.constant 0 : i32
    %38 = vector.broadcast %c0_i32_24 : i32 to vector<1x1x16xi32>
    %39 = arith.cmpi sge, %37, %38 : vector<1x1x16xi32>
    %c1_i32_25 = arith.constant 1 : i32
    %40 = vector.broadcast %c1_i32_25 : i32 to vector<1x1x16xi32>
    %41 = arith.addi %26, %40 : vector<1x1x16xi32>
    %c16_i32_26 = arith.constant 16 : i32
    %42 = vector.broadcast %c16_i32_26 : i32 to vector<1x1x16xi32>
    %43 = arith.cmpi slt, %41, %42 : vector<1x1x16xi32>
    %44 = arith.andi %39, %43 : vector<1x1x16xi1>
    %c0_i32_27 = arith.constant 0 : i32
    %c1_i32_28 = arith.constant 1 : i32
    %45 = arith.muli %c0_i32_27, %c1_i32_28 : i32
    %46 = arith.index_cast %45 : i32 to index
    %c0_29 = arith.constant 0 : index
    %c0_30 = arith.constant 0 : index
    %47 = vector.load %arg1[%46, %c0_29, %c0_30] : memref<1x4x16xf32, #tpu.memory_space<vmem>>, vector<1x4x16xf32>
    %c1_i32_31 = arith.constant 1 : i32
    %48 = tpu.dynamic_rotate %47 by %c1_i32_31 dim 2 : vector<1x4x16xf32>, i32 -> vector<1x4x16xf32>
    %cst = arith.constant 0.000000e+00 : f32
    %49 = vector.shape_cast %35 : vector<1x1x16xi1> to vector<1x1x16xi1>
    %50 = vector.broadcast %49 : vector<1x1x16xi1> to vector<1x4x16xi1>
    %51 = vector.broadcast %cst : f32 to vector<1x4x16xf32>
    %52 = arith.select %50, %48, %51 : vector<1x4x16xi1>, vector<1x4x16xf32>
    "tpu.trace_start"() <{level = 10 : i32, message = "boc,bcl->bol"}> : () -> ()
    %cst_32 = arith.constant dense<0.000000e+00> : vector<1x8x16xf32>
    %53 = tpu.matmul %2, %52, %cst_32 {dimension_numbers = #tpu.dot_dimension_numbers<[2], [1], [1], [2], [0, 0, 0, 1, 1, 2], [0], [0]>} : vector<1x8x4xf32>, vector<1x4x16xf32>, vector<1x8x16xf32> -> vector<1x8x16xf32>
    %cst_33 = arith.constant dense<0.000000e+00> : vector<1x8x16xf32>
    %54 = tpu.matmul %5, %47, %cst_33 {dimension_numbers = #tpu.dot_dimension_numbers<[2], [1], [1], [2], [0, 0, 0, 1, 1, 2], [0], [0]>} : vector<1x8x4xf32>, vector<1x4x16xf32>, vector<1x8x16xf32> -> vector<1x8x16xf32>
    "tpu.trace_stop"() : () -> ()
    %55 = arith.addf %53, %54 : vector<1x8x16xf32>
    %c15_i32 = arith.constant 15 : i32
    %56 = tpu.dynamic_rotate %47 by %c15_i32 dim 2 : vector<1x4x16xf32>, i32 -> vector<1x4x16xf32>
    %cst_34 = arith.constant 0.000000e+00 : f32
    %57 = vector.shape_cast %44 : vector<1x1x16xi1> to vector<1x1x16xi1>
    %58 = vector.broadcast %57 : vector<1x1x16xi1> to vector<1x4x16xi1>
    %59 = vector.broadcast %cst_34 : f32 to vector<1x4x16xf32>
    %60 = arith.select %58, %56, %59 : vector<1x4x16xi1>, vector<1x4x16xf32>
    "tpu.trace_start"() <{level = 10 : i32, message = "boc,bcl->bol"}> : () -> ()
    %cst_35 = arith.constant dense<0.000000e+00> : vector<1x8x16xf32>
    %61 = tpu.matmul %8, %60, %cst_35 {dimension_numbers = #tpu.dot_dimension_numbers<[2], [1], [1], [2], [0, 0, 0, 1, 1, 2], [0], [0]>} : vector<1x8x4xf32>, vector<1x4x16xf32>, vector<1x8x16xf32> -> vector<1x8x16xf32>
    "tpu.trace_stop"() : () -> ()
    %62 = arith.addf %55, %61 : vector<1x8x16xf32>
    %63 = vector.broadcast %21 : vector<1x8x1xf32> to vector<1x8x16xf32>
    %64 = arith.addf %62, %63 : vector<1x8x16xf32>
    %cst_36 = arith.constant 0.000000e+00 : f32
    %65 = vector.broadcast %cst_36 : f32 to vector<1x8x16xf32>
    %66 = arith.cmpf oge, %64, %65 : vector<1x8x16xf32>
    %cst_37 = arith.constant 2.000000e-01 : f32
    %67 = vector.broadcast %cst_37 : f32 to vector<1x8x16xf32>
    %68 = arith.mulf %67, %64 : vector<1x8x16xf32>
    %69 = arith.select %66, %64, %68 : vector<1x8x16xi1>, vector<1x8x16xf32>
    %c1_i32_38 = arith.constant 1 : i32
    %70 = tpu.dynamic_rotate %69 by %c1_i32_38 dim 2 : vector<1x8x16xf32>, i32 -> vector<1x8x16xf32>
    %cst_39 = arith.constant 0.000000e+00 : f32
    %71 = vector.shape_cast %35 : vector<1x1x16xi1> to vector<1x1x16xi1>
    %72 = vector.broadcast %71 : vector<1x1x16xi1> to vector<1x8x16xi1>
    %73 = vector.broadcast %cst_39 : f32 to vector<1x8x16xf32>
    %74 = arith.select %72, %70, %73 : vector<1x8x16xi1>, vector<1x8x16xf32>
    "tpu.trace_start"() <{level = 10 : i32, message = "boc,bcl->bol"}> : () -> ()
    %cst_40 = arith.constant dense<0.000000e+00> : vector<1x8x16xf32>
    %75 = tpu.matmul %11, %74, %cst_40 {dimension_numbers = #tpu.dot_dimension_numbers<[2], [1], [1], [2], [0, 0, 0, 1, 1, 2], [0], [0]>} : vector<1x8x8xf32>, vector<1x8x16xf32>, vector<1x8x16xf32> -> vector<1x8x16xf32>
    %cst_41 = arith.constant dense<0.000000e+00> : vector<1x8x16xf32>
    %76 = tpu.matmul %14, %69, %cst_41 {dimension_numbers = #tpu.dot_dimension_numbers<[2], [1], [1], [2], [0, 0, 0, 1, 1, 2], [0], [0]>} : vector<1x8x8xf32>, vector<1x8x16xf32>, vector<1x8x16xf32> -> vector<1x8x16xf32>
    "tpu.trace_stop"() : () -> ()
    %77 = arith.addf %75, %76 : vector<1x8x16xf32>
    %c15_i32_42 = arith.constant 15 : i32
    %78 = tpu.dynamic_rotate %69 by %c15_i32_42 dim 2 : vector<1x8x16xf32>, i32 -> vector<1x8x16xf32>
    %cst_43 = arith.constant 0.000000e+00 : f32
    %79 = vector.shape_cast %44 : vector<1x1x16xi1> to vector<1x1x16xi1>
    %80 = vector.broadcast %79 : vector<1x1x16xi1> to vector<1x8x16xi1>
    %81 = vector.broadcast %cst_43 : f32 to vector<1x8x16xf32>
    %82 = arith.select %80, %78, %81 : vector<1x8x16xi1>, vector<1x8x16xf32>
    "tpu.trace_start"() <{level = 10 : i32, message = "boc,bcl->bol"}> : () -> ()
    %cst_44 = arith.constant dense<0.000000e+00> : vector<1x8x16xf32>
    %83 = tpu.matmul %17, %82, %cst_44 {dimension_numbers = #tpu.dot_dimension_numbers<[2], [1], [1], [2], [0, 0, 0, 1, 1, 2], [0], [0]>} : vector<1x8x8xf32>, vector<1x8x16xf32>, vector<1x8x16xf32> -> vector<1x8x16xf32>
    "tpu.trace_stop"() : () -> ()
    %84 = arith.addf %77, %83 : vector<1x8x16xf32>
    %85 = vector.broadcast %23 : vector<1x8x1xf32> to vector<1x8x16xf32>
    %86 = arith.addf %84, %85 : vector<1x8x16xf32>
    "tpu.trace_start"() <{level = 10 : i32, message = "boc,bcl->bol"}> : () -> ()
    %cst_45 = arith.constant dense<0.000000e+00> : vector<1x8x16xf32>
    %87 = tpu.matmul %19, %47, %cst_45 {dimension_numbers = #tpu.dot_dimension_numbers<[2], [1], [1], [2], [0, 0, 0, 1, 1, 2], [0], [0]>} : vector<1x8x4xf32>, vector<1x4x16xf32>, vector<1x8x16xf32> -> vector<1x8x16xf32>
    "tpu.trace_stop"() : () -> ()
    %88 = vector.broadcast %25 : vector<1x8x1xf32> to vector<1x8x16xf32>
    %89 = arith.addf %87, %88 : vector<1x8x16xf32>
    %90 = arith.addf %89, %86 : vector<1x8x16xf32>
    %cst_46 = arith.constant 0.000000e+00 : f32
    %91 = vector.broadcast %cst_46 : f32 to vector<1x8x16xf32>
    %92 = arith.cmpf oge, %90, %91 : vector<1x8x16xf32>
    %cst_47 = arith.constant 2.000000e-01 : f32
    %93 = vector.broadcast %cst_47 : f32 to vector<1x8x16xf32>
    %94 = arith.mulf %93, %90 : vector<1x8x16xf32>
    %95 = arith.select %92, %90, %94 : vector<1x8x16xi1>, vector<1x8x16xf32>
    %96 = arith.index_cast %45 : i32 to index
    %c0_48 = arith.constant 0 : index
    %c0_49 = arith.constant 0 : index
    %97 = vector.load %arg8[%96, %c0_48, %c0_49] : memref<1x8x16xf32, #tpu.memory_space<vmem>>, vector<1x8x16xf32>
    tpu.vector_store %arg8[%96, %c0_48, %c0_49], %95 {strides = array<i32>} : memref<1x8x16xf32, #tpu.memory_space<vmem>>, vector<1x8x16xf32>,
    %c1_i32_50 = arith.constant 1 : i32
    return
  }
  func.func @transform_0(%arg0: i32) -> (i32, i32, i32) {
    %c0_i32 = arith.constant 0 : i32
    %c0_i32_0 = arith.constant 0 : i32
    %c0_i32_1 = arith.constant 0 : i32
    return %arg0, %c0_i32, %c0_i32_0 : i32, i32, i32
  }
  func.func @transform_1(%arg0: i32) -> (i32, i32, i32) {
    %c0_i32 = arith.constant 0 : i32
    %c0_i32_0 = arith.constant 0 : i32
    %c0_i32_1 = arith.constant 0 : i32
    %c0_i32_2 = arith.constant 0 : i32
    return %c0_i32, %c0_i32_0, %c0_i32_1 : i32, i32, i32
  }
  func.func @transform_2(%arg0: i32) -> (i32, i32) {
    %c0_i32 = arith.constant 0 : i32
    %c0_i32_0 = arith.constant 0 : i32
    %c0_i32_1 = arith.constant 0 : i32
    return %c0_i32, %c0_i32_0 : i32, i32
  }
  func.func @transform_3(%arg0: i32) -> (i32, i32, i32) {
    %c0_i32 = arith.constant 0 : i32
    %c0_i32_0 = arith.constant 0 : i32
    %c0_i32_1 = arith.constant 0 : i32
    %c0_i32_2 = arith.constant 0 : i32
    return %c0_i32, %c0_i32_0, %c0_i32_1 : i32, i32, i32
  }
  func.func @transform_4(%arg0: i32) -> (i32, i32) {
    %c0_i32 = arith.constant 0 : i32
    %c0_i32_0 = arith.constant 0 : i32
    %c0_i32_1 = arith.constant 0 : i32
    return %c0_i32, %c0_i32_0 : i32, i32
  }
  func.func @transform_5(%arg0: i32) -> (i32, i32) {
    %c0_i32 = arith.constant 0 : i32
    %c0_i32_0 = arith.constant 0 : i32
    %c0_i32_1 = arith.constant 0 : i32
    return %c0_i32, %c0_i32_0 : i32, i32
  }
  func.func @transform_6(%arg0: i32) -> (i32, i32) {
    %c0_i32 = arith.constant 0 : i32
    %c0_i32_0 = arith.constant 0 : i32
    %c0_i32_1 = arith.constant 0 : i32
    return %c0_i32, %c0_i32_0 : i32, i32
  }
  func.func @transform_7(%arg0: i32) -> (i32, i32, i32) {
    %c0_i32 = arith.constant 0 : i32
    %c0_i32_0 = arith.constant 0 : i32
    %c0_i32_1 = arith.constant 0 : i32
    return %arg0, %c0_i32, %c0_i32_0 : i32, i32, i32
  }
}

</mosaic_0001>

<bundles_post_ra>
// kernel: tpu_custom_call.1
= control target key start
LH: loop header
LB: loop body
LE: loop exit
PB: predicated region body
PF: predicated region fallthrough
CT: control target
= control target key end

     0   :  { %12 = vsyncpa [#allocation3], 0  ;;  %s1374_s0 = inlined_call_operand.vmem [shape: f32[2,4,16], index: 0, kind: input, shape index: {}]   ;;  %s1375_s1 = inlined_call_operand.vmem [shape: f32[3,8,4], index: 1, kind: input, shape index: {}]   ;;  %s1376_s2 = inlined_call_operand.vmem [shape: f32[8,1], index: 2, kind: input, shape index: {}]   ;;  %s1377_s3 = inlined_call_operand.vmem [shape: f32[3,8,8], index: 3, kind: input, shape index: {}]   ;;  %s1378_s4 = inlined_call_operand.vmem [shape: f32[8,1], index: 4, kind: input, shape index: {}]   ;;  %s1379_s5 = inlined_call_operand.vmem [shape: f32[8,4], index: 5, kind: input, shape index: {}]   ;;  %s1380_s6 = inlined_call_operand.vmem [shape: f32[8,1], index: 6, kind: input, shape index: {}]   ;;  %s1381_s7 = inlined_call_operand.hbm [shape: f32[2,8,16], index: 7, kind: output, shape index: {}]  }
   0x1   :  { %14 = vsyncpa [#allocation3 + $0x1], 0  ;;  %s1190_s24 = smov 0   ;;  %s1192_s25 = smov 0  }
   0x2   :  { %s1194_s26 = smov 0   ;;  %s1196_s27 = smov 0  }
   0x3 LB: > { %s1211_s28 = sadd.s32 4294967295, %s1141_s27   ;;  %s958_s29 = sadd.s32 4294967294, %s1141_s27   ;;  %s1141_s27 = sphi %s1196_s27, %s1389_s27   ;;  %s1137_s26 = sphi %s1194_s26, %s1388_s26   ;;  %s1133_s25 = sphi %s1192_s25, %s1387_s25   ;;  %s1129_s24 = sphi %s1190_s24, %s1386_s24  }
   0x4   : > { %s1215_s30 = sadd.s32 1, %s1141_s27   ;;  %s179_s8 = sadd.s32 1, %s1137_s26 }
   0x5   : > { %s176_s9 = ssub.s32 %s1141_s27, %s1215_s30  ;;  %p189_p0 = scmp.ne.s32.totalorder %s1137_s26, %s1133_s25 }
   0x6   : > { %p177_p1 = scmp.eq.s32.totalorder %s176_s9, 0  ;;  %p190_p2 = scmp.eq.s32.totalorder %s1211_s28, 1 }
   0x7   : > { %p195_p3 = scmp.ne.s32.totalorder %s1133_s25, %s1129_s24  ;;  %p196_p4 = scmp.eq.s32.totalorder %s958_s29, 1 }
   0x8   : > { %s1226_s10 = scalar_select %p177_p1, %s1137_s26, %s179_s8  }
   0x9   : > { %p1228_p5 = por %p190_p2, %p189_p0  ;;  %p1232_p6 = por %p196_p4, %p195_p3 }
   0xa   : > { %p961_p7 = scmp.ge.s32.totalorder %s1141_s27, 1  ;;  %p239_p8 = scmp.lt.s32.totalorder %s1141_s27, 3 }
   0xc   : > { %p240_p9 = pnand %p961_p7, %p239_p8 }
   0xd   : > { %p270_p10 = scmp.lt.s32.totalorder (!%p240_p9), %s1211_s28, 1  ;;  %s1143_s18 = smov (!%p240_p9), 16  }
   0xe   : > { %243 = sbr.rel (%p240_p9) target bundleno = 1142 (0x476), region = 48  ;;  %s1147_s23 = smov (!%p240_p9), 113  }
   0xf   : > { %s1148_s29 = smov (!%p240_p9), 127   ;;  %s982_s15 = sshll.u32 (!%p240_p9), %s1211_s28, 7 }
  0x10   : > { %s1339_s20 = scalar_lea.hbm (!%p240_p9), %s1381_s7, %s982_s15 }
  0x13   : > { %s271_s13 = scalar_select %p270_p10, %s1211_s28, 1  ;;  %v1144_v1 = vmov 0.0   ;;  %vm1145_vm0 = vmmov 0   ;;  %vm299_vm1 = vcmask 1047680   ;;  %vm317_vm2 = vcmask 1043456   ;;  %v964_v4 = vld [vmem:[%s1375_s1 + $0x8] sm:$0xff] }
  0x14   : > { %999 = vmatprep.subr.mxu0 %v1144_v1  ;;  %1001 = vmatprep.mubr.msk.f32.mxu0 %vm1145_vm0, %v1144_v1  ;;  %vm313_vm3 = vcmask 31744   ;;  %v285_v5 = vld [vmem:[%s1376_s2] sm:$0xff]  ;;  %v1146_v6 = vmov 0   ;;  %v288_v9 = vlaneseq  ;;  %v965_v18 = vld [vmem:[%s1375_s1 + $0x10] sm:$0xff]  ;;  %v966_v34 = vld [vmem:[%s1377_s3 + $0x8] sm:$0xff]  ;;  %vm570_vm9 = vcmask 64512  }
  0x15   : > { %s963_s14 = sshll.u32 %s271_s13, 2  ;;  %1004 = vmatprep.subr.mxu1 %v1144_v1  ;;  %1006 = vmatprep.mubr.msk.f32.mxu1 %vm1145_vm0, %v1144_v1  ;;  %v274_v15 = vld [vmem:[%s1375_s1] sm:$0xff]  ;;  %v967_v40 = vld [vmem:[%s1377_s3 + $0x10] sm:$0xff]  ;;  %s267_s13 = sand.u32 1, %s1133_s25   ;;  %vm883_vm11 = vcmask 130048  }
  0x16   : > { %s273_s17 = scalar_lea.vmem %s1374_s0, %s963_s14  ;;  %1079 = vset.pattern.permute.xlu0 %v1146_v6  ;;  %1080 = vset.pattern.permute.xlu1 %v1146_v6  ;;  %v289_v10 = vand.u32 127, %v288_v9  ;;  %v286_v37 = vld [vmem:[%s1378_s4] sm:$0xff]  ;;  %s962_s14 = sshll.u32 %s267_s13, 3 }
  0x17   : > { %v1243_v0 = vld [vmem:[%s273_s17] sm:$0xf]  ;;  %s269_s16 = scalar_lea.vmem [#allocation2], %s962_s14  ;;  %s886_s21 = scalar_lea.sflag [#allocation3], %s267_s13 }
  0x18   : > { %300 = vrot.lane.b32.xlu0 %v1243_v0, %s1143_s18  ;;  %1000 = vmatpush3.msk.msra.mxu0 %vm317_vm2, %v1243_v0  ;;  %v290_v11 = vadd.s32 4294967295, %v289_v10  ;;  %v294_v13 = vadd.s32 1, %v289_v10  ;;  %v287_v38 = vld [vmem:[%s1380_s6] sm:$0xff]  ;;  %s899_s17 = sshll.u32 %s269_s16, 4  ;;  %s1149_s28 = smov [#allocation2]   ;;  %s900_s17 = int_to_ptr.vmem [resolvable:$true] %s899_s17 }
  0x19   : > { %1002 = vmatmul.mubr.msk.f32.vlgmr.msra.gmra.mxu0 %vm313_vm3, %v964_v4  ;;  %1009 = vmatprep.subr.mxu0 %v1144_v1  ;;  %v279_v39 = vld [vmem:[%s1377_s3] sm:$0xff]  ;;  %s1081_s22 = scalar_lea.vmem %s900_s17, 128  ;;  %s1085_s8 = sshll.u32 %s1149_s28, 4  ;;  %s1086_s8 = int_to_ptr.vmem [resolvable:$false] %s1085_s8 }
  0x1a   : > { %1011 = vmatprep.mubr.msk.f32.mxu0 %vm1145_vm0, %v1144_v1  ;;  %vm291_vm4 = vcmp.ge.s32.totalorder %v290_v11, 0  ;;  %vm292_vm5 = vcmp.lt.s32.totalorder %v290_v11, 16  ;;  %vm296_vm7 = vcmp.lt.s32.totalorder %v294_v13, 16  ;;  %v284_v43 = vld [vmem:[%s1379_s5] sm:$0xff]  ;;  %p1082_p11 = scmp.ne.s32.totalorder %s900_s17, %s1081_s22  ;;  %s1087_s9 = scalar_lea.vmem %s1086_s8, 256 }
  0x1b   : > { %vm1272_vm6 = vmand %vm291_vm4, %vm292_vm5  ;;  %p1088_p0 = scmp.lt.s32.totalorder %s900_s17, %s1086_s8  ;;  %p1089_p1 = scmp.lt.s32.totalorder %s1087_s9, %s1081_s22 }
  0x1c   : > { %p1083_p12 = pnand %p1082_p11, %p1228_p5 }
  0x1d   : > { %p1090_p2 = por %p1089_p1, %p1088_p0 }
  0x1e   : > { %p1084_p13 = pneg %p1083_p12 }
  0x20   : > { %p1091_p3 = pnand %p1090_p2, %p1084_p13 }
  0x8a   : > { %v301_v2 = vpop.permute.xlu0 %300 }
  0x8b   : > { %v302_v3 = vsel %vm299_vm1, %v301_v2, %v1243_v0 }
  0x8c   : > { %303 = vrot.lane.b32.xlu0 %v302_v3, %s1143_s18 }
  0x90   : > { %552 = vperm.xlu0 %1079, %v285_v5  }
  0xd9   : > { %v387_v20 = vpop.f32.mrf.mxu0 }
  0xdb   : > { %v1003_v21 = vpop.f32.mrf.mxu0 }
  0xfe   : > { %v304_v7 = vpop.permute.xlu0 %303 }
  0xff   : > { %v305_v8 = vsel %vm299_vm1, %v304_v7, %v1243_v0 }
 0x100   : > { %309 = vrot.lane.b32.xlu1 %v305_v8, %s1147_s23 }
 0x104   : > { %469 = vrot.lane.b32.xlu1 %v305_v8, %s1148_s29 }
 0x10b   : > { %v553_v26 = vpop.permute.xlu0 %552 }
 0x172   : > { %v310_v14 = vpop.permute.xlu1 %309 }
 0x173   : > { %v312_v16 = vsel %vm1272_vm6, %v310_v14, 0.0 }
 0x174   : > { %1005 = vmatpush3.msk.msra.mxu1 %vm317_vm2, %v312_v16 }
 0x175   : > { %1007 = vmatmul.mubr.msk.f32.vlgmr.msra.gmra.mxu1 %vm313_vm3, %v274_v15  ;;  %1014 = vmatprep.subr.mxu1 %v1144_v1 }
 0x176   : > { %v470_v17 = vpop.permute.xlu1 %469  ;;  %1016 = vmatprep.mubr.msk.f32.mxu1 %vm1145_vm0, %v1144_v1 }
 0x177   : > { %v472_v19 = vsel %vm296_vm7, %v470_v17, 0.0 }
 0x178   : > { %1010 = vmatpush3.msk.msra.mxu0 %vm317_vm2, %v472_v19 }
 0x179   : > { %1012 = vmatmul.mubr.msk.f32.vlgmr.msra.gmra.mxu0 %vm313_vm3, %v965_v18  ;;  %1019 = vmatprep.subr.mxu0 %v1144_v1 }
 0x17a   : > { %1021 = vmatprep.mubr.msk.f32.mxu0 %vm1145_vm0, %v1144_v1 }
 0x235   : > { %v463_v22 = vpop.f32.mrf.mxu1 }
 0x236   : > { %v464_v24 = vadd.f32 %v463_v22, %v387_v20 }
 0x237   : > { %v1008_v23 = vpop.f32.mrf.mxu1 }
 0x239   : > { %v545_v25 = vpop.f32.mrf.mxu0 }
 0x23a   : > { %v549_v27 = vadd.f32 %v545_v25, %v464_v24 }
 0x23b   : > { %v1013_v28 = vpop.f32.mrf.mxu0 }
 0x23c   : > { %v555_v29 = vadd.f32 %v553_v26, %v549_v27 }
 0x23e   : > { %vm556_vm8 = vcmp.ge.f32.partialorder %v555_v29, 0.0  ;;  %v557_v30 = vmul.f32 0.2, %v555_v29 }
 0x240   : > { %v558_v31 = vsel %vm556_vm8, %v555_v29, %v557_v30 }
 0x241   : > { %559 = vrot.lane.b32.xlu1 %v558_v31, %s1143_s18  ;;  %1015 = vmatpush3.msra.mxu1 %v558_v31 }
 0x242   : > { %1024 = vmatprep.subr.mxu1 %v1144_v1  ;;  %1017 = vmatmul.mubr.msk.f32.vlgmr.msra.gmra.mxu1 %vm570_vm9, %v966_v34 }
 0x243   : > { %1026 = vmatprep.mubr.msk.f32.mxu1 %vm1145_vm0, %v1144_v1 }
 0x2b3   : > { %v560_v32 = vpop.permute.xlu1 %559 }
 0x2b4   : > { %v561_v33 = vsel %vm299_vm1, %v560_v32, %v558_v31 }
 0x2b5   : > { %562 = vrot.lane.b32.xlu1 %v561_v33, %s1143_s18 }
 0x302   : > { %v640_v44 = vpop.f32.mrf.mxu1 }
 0x304   : > { %v1018_v45 = vpop.f32.mrf.mxu1 }
 0x327   : > { %v563_v35 = vpop.permute.xlu1 %562 }
 0x328   : > { %v564_v36 = vsel %vm299_vm1, %v563_v35, %v558_v31 }
 0x329   : > { %717 = vrot.lane.b32.xlu1 %v564_v36, %s1148_s29  ;;  %566 = vrot.lane.b32.xlu0 %v564_v36, %s1147_s23 }
 0x32d   : > { %797 = vperm.xlu0 %1079, %v286_v37   ;;  %803 = vperm.xlu1 %1080, %v287_v38  }
 0x39b   : > { %v718_v41 = vpop.permute.xlu1 %717  ;;  %v567_v42 = vpop.permute.xlu0 %566 }
 0x39c   : > { %1020 = vmatpush3.msk.msra.mxu0 %vm1272_vm6, %v567_v42  ;;  %1025 = vmatpush3.msk.msra.mxu1 %vm296_vm7, %v718_v41 }
 0x39d   : > { %1022 = vmatmul.mubr.msk.f32.vlgmr.msra.gmra.mxu0 %vm570_vm9, %v279_v39  ;;  %1027 = vmatmul.mubr.msk.f32.vlgmr.msra.gmra.mxu1 %vm570_vm9, %v967_v40 }
 0x39e   : > { %1029 = vmatprep.subr.mxu0 %v1144_v1  ;;  %1031 = vmatprep.mubr.msk.f32.mxu0 %vm1145_vm0, %v1144_v1 }
 0x39f   : > { %1030 = vmatpush3.msk.msra.mxu0 %vm317_vm2, %v1243_v0 }
 0x3a1   : > { %1032 = vmatmul.mubr.msk.f32.vlgmr.msra.gmra.mxu0 %vm313_vm3, %v284_v43 }
 0x3a8   : > { %v804_v49 = vpop.permute.xlu1 %803  ;;  %v798_v53 = vpop.permute.xlu0 %797 }
 0x45d   : > { %v713_v46 = vpop.f32.mrf.mxu0  ;;  %v790_v47 = vpop.f32.mrf.mxu1 }
 0x45e   : > { %v714_v48 = vadd.f32 %v713_v46, %v640_v44 }
 0x45f   : > { %v1023_v50 = vpop.f32.mrf.mxu0  ;;  %v1028_v51 = vpop.f32.mrf.mxu1 }
 0x460   : > { %v794_v52 = vadd.f32 %v790_v47, %v714_v48 }
 0x461   : > { %v875_v54 = vpop.f32.mrf.mxu0 }
 0x462   : > { %v800_v55 = vadd.f32 %v798_v53, %v794_v52  ;;  %v876_v56 = vadd.f32 %v875_v54, %v804_v49 }
 0x463   : > { %v1033_v57 = vpop.f32.mrf.mxu0 }
 0x464   : > { %v879_v58 = vadd.f32 %v876_v56, %v800_v55 }
 0x466   : > { %vm880_vm10 = vcmp.ge.f32.partialorder %v879_v58, 0.0  ;;  %v881_v59 = vmul.f32 0.2, %v879_v58 }
 0x468   : > { %v882_v60 = vsel %vm880_vm10, %v879_v58, %v881_v59 }
 0x469   : > { %884 = vst.msk [vmem:[%s269_s16] sm:$0xff] %vm883_vm11, %v882_v60 }
 0x46a   : > { %1094 = shalt.err (!%p1091_p3)
}
 0x46b   : > { %s1095_s23 = scalar_lea.hbm %s1339_s20, 128  ;;  %s1099_s14 = scalar_lea.hbm %s1381_s7, 256 }
 0x46c   : > { %p1096_p4 = scmp.ne.s32.totalorder %s1339_s20, %s1095_s23  ;;  %p1100_p9 = scmp.lt.s32.totalorder %s1339_s20, %s1381_s7 }
 0x46d   : > { %p1101_p10 = scmp.lt.s32.totalorder %s1099_s14, %s1095_s23 }
 0x46e   : > { %p1097_p7 = pnand %p1096_p4, %p1228_p5 }
 0x46f   : > { %p1102_p11 = por %p1101_p10, %p1100_p9 }
 0x470   : > { %p1098_p8 = pneg %p1097_p7 }
 0x472   : > { %p1103_p12 = pnand %p1102_p11, %p1098_p8 }
 0x474   : > { %1106 = shalt.err (!%p1103_p12)
}
 0x475   : > { %1034 = dma.vmem_to_hbm [thread:$0]  (%p1228_p5), %s900_s17, 128, %s1339_s20, %s886_s21  }
 0x476 PF: > { %p1040_p13 = scmp.ge.s32.totalorder %s1141_s27, 2  ;;  %s911_s19 = sand.u32 1, %s1129_s24  }
 0x477   : > { %s912_s18 = scalar_lea.sflag [#allocation3], %s911_s19 }
 0x478   : > { %p1037_p0 = pnand %p1040_p13, %p1232_p6 }
 0x47a   : > { %p1038_p1 = pneg %p1037_p0 }
 0x47c   : > { %1124 = dma.done.wait (%p1038_p1), %s912_s18, 128  }
 0x47d   : > { %1126 = vsyncadd (%p1038_p1), %s912_s18, 4294967168  ;;  %p17_p2 = scmp.ge.s32.totalorder %s1215_s30, 4   ;;  %s1386_s24 = smov %s1133_s25 }
 0x47e   : > { %s1387_s25 = smov %s1137_s26  ;;  %s1388_s26 = smov %s1226_s10 }
 0x47f   : > { %s1389_s27 = smov %s1215_s30  ;;  %19 = sbr.rel (!%p17_p2) target bundleno = 3 (0x3), region = 87 }
 0x484   :  { %917 = vsyncpa [#allocation3], 1 }
 0x485   :  { %919 = vsyncpa [#allocation3 + $0x1], 1 }

</bundles_post_ra>
